<compile_context>
chip_gen: v5e
topology: v5e:2x2
jax: 0.10.0
libtpu: 0.0.40
codegen_flags: <defaults>
</compile_context>

<pallas_src>
import functools

import jax
import jax.numpy as jnp
from jax.experimental import pallas as pl
from jax.experimental.pallas import tpu as pltpu

BN_EPS = 1e-5  # torch.nn.BatchNorm2d default


def _round_up(v, m):
    return ((v + m - 1) // m) * m


def _pick_block_b(B, C, IC, HWp):
    """Batch elements per grid step: amortize step overhead, keep >=2 grid
    steps (megacore / v7x dual-TC), stay well inside the default scoped VMEM
    (re-derived for v7x's smaller 64 MiB VMEM as well)."""
    per_b = 2 * (IC + 2 * C) * HWp * 4          # double-buffered stage-2 bytes / element
    vmem_budget = 4 << 20                        # conservative
    cap = max(1, min(8, vmem_budget // max(per_b, 1)))
    bt = 1
    for cand in range(1, min(B, cap) + 1):
        if B % cand == 0 and (B // cand) >= 2:
            bt = cand
    return bt


# ----------------------------- kernel 1 -------------------------------------
# Per batch element (channels on sublanes, padded spatial on lanes):
#   g_x   = Wg_even @ theta[:, :HWp] + Wg_odd @ theta[:, HWp:] + bg   (== Wg @ x + bg)
#   f     = theta @ theta^T                                           (joint affinity)
#   p     = softmax(f, torch dim=1)  == softmax over axis 0 of the (IC, IC) tile
#   y     = p @ g_x
def _jre_attn_kernel(th_ref, wge_ref, wgo_ref, bg_ref, y_ref, *, hwp):
    wge = wge_ref[...]                       # (IC, IC)
    wgo = wgo_ref[...]                       # (IC, IC)
    bg = bg_ref[...]                         # (IC, 1)
    for t in range(th_ref.shape[0]):         # static unroll over Bt
        th = th_ref[t]                       # (IC, 2*HWp)
        tha = th[:, :hwp]                    # even channels  (IC, HWp)
        thb = th[:, hwp:]                    # odd channels   (IC, HWp)
        g_x = (jnp.dot(wge, tha, preferred_element_type=jnp.float32)
               + jnp.dot(wgo, thb, preferred_element_type=jnp.float32)
               + bg)                         # (IC, HWp)

        # f[i, j] = sum_m theta[i, m] * theta[j, m]   (zero-padded lanes add 0)
        f = jax.lax.dot_general(
            th, th, dimension_numbers=(((1,), (1,)), ((), ())),
            preferred_element_type=jnp.float32)          # (IC, IC)

        # torch F.softmax(f, dim=1) on (B, IC, IC) -> axis 0 of the 2-D tile.
        f = f - jnp.max(f, axis=0, keepdims=True)
        e = jnp.exp(f)
        p = e * pl.reciprocal(jnp.sum(e, axis=0, keepdims=True), approx=True)

        y_ref[t] = jnp.dot(p, g_x, preferred_element_type=jnp.float32)


# ----------------------------- kernel 2 -------------------------------------
# Per batch element (after the torch permute/view glue):
#   z = (Wc_fold @ y_new + bc_fold) + x     (1x1 conv "W" with BN folded in, residual)
def _jre_out_kernel(y_ref, x_ref, wc_ref, bc_ref, z_ref):
    wc = wc_ref[...]                         # (C, IC)  BN-folded
    bc = bc_ref[...]                         # (C, 1)   BN-folded
    for t in range(y_ref.shape[0]):          # static unroll over Bt
        wy = jnp.dot(wc, y_ref[t], preferred_element_type=jnp.float32) + bc
        z_ref[t] = wy + x_ref[t]


# ------------------------------ wrapper --------------------------------------
@jax.jit
def jre_forward(x, wg, bg, wc, bc, gamma, beta, run_mean, run_var):
    B, C, H, W = x.shape
    assert C % 2 == 0, "joint-level path assumes in_channels even (inter_channels = C//2)"
    HW = H * W
    IC = C // 2
    HWp = _round_up(HW, 128)                 # lane-dense stores

    x_flat = x.reshape(B, C, HW).astype(jnp.float32)
    if HWp != HW:
        x_flat = jnp.pad(x_flat, ((0, 0), (0, 0), (0, HWp - HW)))
    # torch: theta_x = x.view(b, inter_channels, -1) -- same HBM bytes, free reshape.
    theta = x_flat.reshape(B, IC, 2 * HWp)

    # ---- host-side weight preparation (tiny, done once under jit) ----------
    wge = wg[:, 0::2]                        # (IC, IC)  weights hitting even channels
    wgo = wg[:, 1::2]                        # (IC, IC)  weights hitting odd channels
    bg2 = bg.reshape(IC, 1)
    inv_std = gamma / jnp.sqrt(run_var + BN_EPS)
    wc_fold = wc * inv_std[:, None]                                   # (C, IC)
    bc_fold = (bc * inv_std + beta - run_mean * inv_std).reshape(C, 1)

    Bt = _pick_block_b(B, C, IC, HWp)
    grid = (B // Bt,)

    # --- stage 1: affinity + attention-weighted aggregation -----------------
    y = pl.pallas_call(
        functools.partial(_jre_attn_kernel, hwp=HWp),
        out_shape=jax.ShapeDtypeStruct((B, IC, HWp), jnp.float32),
        grid_spec=pltpu.PrefetchScalarGridSpec(
            num_scalar_prefetch=0,
            grid=grid,
            in_specs=[
                pl.BlockSpec((Bt, IC, 2 * HWp), lambda b: (b, 0, 0)),
                pl.BlockSpec((IC, IC), lambda b: (0, 0)),
                pl.BlockSpec((IC, IC), lambda b: (0, 0)),
                pl.BlockSpec((IC, 1), lambda b: (0, 0)),
            ],
            out_specs=pl.BlockSpec((Bt, IC, HWp), lambda b: (b, 0, 0)),
        ),
        compiler_params=pltpu.CompilerParams(dimension_semantics=("parallel",)),
    )(theta, wge, wgo, bg2)

    # torch: y.permute(0, 2, 1).contiguous().view(b, IC, h, w)
    # Must be done on the *unpadded* HW columns, then re-padded (zeros are
    # never read back into valid output columns).
    y_valid = y[:, :, :HW] if HWp != HW else y
    y_new = jnp.transpose(y_valid, (0, 2, 1)).reshape(B, IC, HW)
    if HWp != HW:
        y_new = jnp.pad(y_new, ((0, 0), (0, 0), (0, HWp - HW)))

    # --- stage 2: 1x1 conv W (BN folded) + residual ---------------------------
    z_flat = pl.pallas_call(
        _jre_out_kernel,
        out_shape=jax.ShapeDtypeStruct((B, C, HWp), jnp.float32),
        grid_spec=pltpu.PrefetchScalarGridSpec(
            num_scalar_prefetch=0,
            grid=grid,
            in_specs=[
                pl.BlockSpec((Bt, IC, HWp), lambda b: (b, 0, 0)),
                pl.BlockSpec((Bt, C, HWp), lambda b: (b, 0, 0)),
                pl.BlockSpec((C, IC), lambda b: (0, 0)),
                pl.BlockSpec((C, 1), lambda b: (0, 0)),
            ],
            out_specs=pl.BlockSpec((Bt, C, HWp), lambda b: (b, 0, 0)),
        ),
        compiler_params=pltpu.CompilerParams(dimension_semantics=("parallel",)),
    )(y_new, x_flat, wc_fold, bc_fold)

    z = z_flat[:, :, :HW] if HWp != HW else z_flat
    return z.reshape(B, C, H, W)


# --------------------------- pure-JAX reference -------------------------------
def jre_reference(x, wg, bg, wc, bc, gamma, beta, run_mean, run_var):
    B, C, H, W = x.shape
    HW = H * W
    IC = C // 2
    x_flat = x.reshape(B, C, HW)
    g_x = jnp.einsum("oc,bcn->bon", wg, x_flat) + bg[None, :, None]
    th = x.reshape(B, IC, 2 * HW)
    f = jnp.einsum("bim,bjm->bij", th, th)
    p = jax.nn.softmax(f, axis=1)                       # torch dim=1
    y = jnp.einsum("bij,bjn->bin", p, g_x)
    y = jnp.transpose(y, (0, 2, 1)).reshape(B, IC, HW)
    wy = jnp.einsum("oi,bin->bon", wc, y) + bc[None, :, None]
    scale = gamma / jnp.sqrt(run_var + BN_EPS)
    shift = beta - run_mean * scale
    wy = wy * scale[None, :, None] + shift[None, :, None]
    return (wy + x_flat).reshape(B, C, H, W)


if __name__ == "__main__":
    def run_case(B, C, H, W):
        IC = C // 2
        key = jax.random.PRNGKey(0)
        ks = jax.random.split(key, 9)
        x = jax.random.normal(ks[0], (B, C, H, W), jnp.float32)

        # Synthetic parameters (shapes per module __init__).  The module inits
        # the W conv / BN gamma to 0 (z == x at init); use non-zero values so
        # the full compute path is exercised.
        wg = jax.random.normal(ks[1], (IC, C), jnp.float32) * 0.1   # g: 1x1 conv
        bg = jax.random.normal(ks[2], (IC,), jnp.float32) * 0.1
        wc = jax.random.normal(ks[3], (C, IC), jnp.float32) * 0.1   # W: 1x1 conv
        bc = jax.random.normal(ks[4], (C,), jnp.float32) * 0.1
        gamma = 1.0 + jax.random.normal(ks[5], (C,), jnp.float32) * 0.1  # BN weight
        beta = jax.random.normal(ks[6], (C,), jnp.float32) * 0.1         # BN bias
        run_mean = jax.random.normal(ks[7], (C,), jnp.float32) * 0.05
        run_var = 1.0 + 0.1 * jnp.abs(jax.random.normal(ks[8], (C,), jnp.float32))

        z = jax.block_until_ready(
            jre_forward(x, wg, bg, wc, bc, gamma, beta, run_mean, run_var))
        z_ref = jre_reference(x, wg, bg, wc, bc, gamma, beta, run_mean, run_var)
        assert z.shape == (B, C, H, W)
        # approx reciprocal in the softmax denominator -> slightly relaxed tol
        assert jnp.allclose(z, z_ref, rtol=1e-2, atol=1e-2), (
            f"mismatch B={B} C={C} H={H} W={W}: "
            f"max err {float(jnp.max(jnp.abs(z - z_ref)))}")

    run_case(2, 8, 16, 16)   # lane-aligned HW=256, Bt=1 (2 parallel grid steps)
    run_case(2, 8, 14, 14)   # HW=196 -> zero-padded to 256 lanes
    run_case(8, 8, 16, 16)   # Bt=4 batched grid steps, grid=(2,)
    print("KERNEL_OK")
</pallas_src>

<mosaic_0001>
module attributes {stable_mosaic.version = 11 : i64} {
  func.func @_jre_attn_kernel(%arg0: i32, %arg1: memref<1x4x512xf32, #tpu.memory_space<vmem>>, %arg2: memref<4x4xf32, #tpu.memory_space<vmem>>, %arg3: memref<4x4xf32, #tpu.memory_space<vmem>>, %arg4: memref<4x1xf32, #tpu.memory_space<vmem>>, %arg5: memref<1x4x256xf32, #tpu.memory_space<vmem>>) attributes {dimension_semantics = [#tpu.dimension_semantics<parallel>], iteration_bounds = array<i64: 2>, scalar_prefetch = 0 : i64, scratch_operands = 0 : i64, tpu.core_type = #tpu.core_type<tc>, window_params = [{transform_indices = @transform_0, window_bounds = array<i64: 1, 4, 512>}, {pipeline_mode = #tpu.pipeline_mode<synchronous>, transform_indices = @transform_1, window_bounds = array<i64: 4, 4>}, {pipeline_mode = #tpu.pipeline_mode<synchronous>, transform_indices = @transform_2, window_bounds = array<i64: 4, 4>}, {pipeline_mode = #tpu.pipeline_mode<synchronous>, transform_indices = @transform_3, window_bounds = array<i64: 4, 1>}, {transform_indices = @transform_4, window_bounds = array<i64: 1, 4, 256>}]} {
    %c0 = arith.constant 0 : index
    %c0_0 = arith.constant 0 : index
    %0 = vector.load %arg2[%c0, %c0_0] : memref<4x4xf32, #tpu.memory_space<vmem>>, vector<4x4xf32>
    %c0_1 = arith.constant 0 : index
    %c0_2 = arith.constant 0 : index
    %1 = vector.load %arg3[%c0_1, %c0_2] : memref<4x4xf32, #tpu.memory_space<vmem>>, vector<4x4xf32>
    %c0_3 = arith.constant 0 : index
    %c0_4 = arith.constant 0 : index
    %2 = vector.load %arg4[%c0_3, %c0_4] : memref<4x1xf32, #tpu.memory_space<vmem>>, vector<4x1xf32>
    %c0_5 = arith.constant 0 : index
    %c0_6 = arith.constant 0 : index
    %c0_7 = arith.constant 0 : index
    %3 = vector.load %arg1[%c0_5, %c0_6, %c0_7] : memref<1x4x512xf32, #tpu.memory_space<vmem>>, vector<1x4x512xf32>
    %4 = vector.shape_cast %3 : vector<1x4x512xf32> to vector<4x512xf32>
    %5 = vector.extract_strided_slice %4 {offsets = [0, 0], sizes = [4, 256], strides = [1, 1]} : vector<4x512xf32> to vector<4x256xf32>
    %6 = vector.extract_strided_slice %4 {offsets = [0, 256], sizes = [4, 256], strides = [1, 1]} : vector<4x512xf32> to vector<4x256xf32>
    %cst = arith.constant dense<0.000000e+00> : vector<4x256xf32>
    %7 = tpu.matmul %0, %5, %cst {dimension_numbers = #tpu.dot_dimension_numbers<[1], [0], [0], [1], [0, 0, 1, 1], [], []>} : vector<4x4xf32>, vector<4x256xf32>, vector<4x256xf32> -> vector<4x256xf32>
    %cst_8 = arith.constant dense<0.000000e+00> : vector<4x256xf32>
    %8 = tpu.matmul %1, %6, %cst_8 {dimension_numbers = #tpu.dot_dimension_numbers<[1], [0], [0], [1], [0, 0, 1, 1], [], []>} : vector<4x4xf32>, vector<4x256xf32>, vector<4x256xf32> -> vector<4x256xf32>
    %9 = arith.addf %7, %8 : vector<4x256xf32>
    %10 = vector.broadcast %2 : vector<4x1xf32> to vector<4x256xf32>
    %11 = arith.addf %9, %10 : vector<4x256xf32>
    %cst_9 = arith.constant dense<0.000000e+00> : vector<4x4xf32>
    %12 = tpu.matmul %4, %4, %cst_9 {dimension_numbers = #tpu.dot_dimension_numbers<[1], [1], [0], [0], [0, 0, 1, 0], [], []>} : vector<4x512xf32>, vector<4x512xf32>, vector<4x4xf32> -> vector<4x4xf32>
    %cst_10 = arith.constant dense<0xFF800000> : vector<4xf32>
    %13 = vector.multi_reduction <maximumf>, %12, %cst_10 [0] : vector<4x4xf32> to vector<4xf32>
    %14 = vector.shape_cast %13 : vector<4xf32> to vector<1x4xf32>
    %15 = vector.broadcast %14 : vector<1x4xf32> to vector<4x4xf32>
    %16 = arith.subf %12, %15 : vector<4x4xf32>
    %17 = math.exp %16 : vector<4x4xf32>
    %cst_11 = arith.constant dense<0.000000e+00> : vector<4xf32>
    %18 = vector.multi_reduction <add>, %17, %cst_11 [0] : vector<4x4xf32> to vector<4xf32>
    %19 = vector.shape_cast %18 : vector<4xf32> to vector<1x4xf32>
    %20 = tpu.reciprocal %19 {approx = true} : vector<1x4xf32> -> vector<1x4xf32>
    %21 = vector.broadcast %20 : vector<1x4xf32> to vector<4x4xf32>
    %22 = arith.mulf %17, %21 : vector<4x4xf32>
    %cst_12 = arith.constant dense<0.000000e+00> : vector<4x256xf32>
    %23 = tpu.matmul %22, %11, %cst_12 {dimension_numbers = #tpu.dot_dimension_numbers<[1], [0], [0], [1], [0, 0, 1, 1], [], []>} : vector<4x4xf32>, vector<4x256xf32>, vector<4x256xf32> -> vector<4x256xf32>
    %c0_13 = arith.constant 0 : index
    %c0_14 = arith.constant 0 : index
    %c0_15 = arith.constant 0 : index
    %24 = vector.load %arg5[%c0_13, %c0_14, %c0_15] : memref<1x4x256xf32, #tpu.memory_space<vmem>>, vector<1x4x256xf32>
    %25 = vector.shape_cast %24 : vector<1x4x256xf32> to vector<4x256xf32>
    %26 = vector.shape_cast %23 : vector<4x256xf32> to vector<1x4x256xf32>
    tpu.vector_store %arg5[%c0_13, %c0_14, %c0_15], %26 {strides = array<i32>} : memref<1x4x256xf32, #tpu.memory_space<vmem>>, vector<1x4x256xf32>,
    return
  }
  func.func @transform_0(%arg0: i32) -> (i32, i32, i32) {
    %c0_i32 = arith.constant 0 : i32
    %c0_i32_0 = arith.constant 0 : i32
    %c0_i32_1 = arith.constant 0 : i32
    return %arg0, %c0_i32, %c0_i32_0 : i32, i32, i32
  }
  func.func @transform_1(%arg0: i32) -> (i32, i32) {
    %c0_i32 = arith.constant 0 : i32
    %c0_i32_0 = arith.constant 0 : i32
    %c0_i32_1 = arith.constant 0 : i32
    return %c0_i32, %c0_i32_0 : i32, i32
  }
  func.func @transform_2(%arg0: i32) -> (i32, i32) {
    %c0_i32 = arith.constant 0 : i32
    %c0_i32_0 = arith.constant 0 : i32
    %c0_i32_1 = arith.constant 0 : i32
    return %c0_i32, %c0_i32_0 : i32, i32
  }
  func.func @transform_3(%arg0: i32) -> (i32, i32) {
    %c0_i32 = arith.constant 0 : i32
    %c0_i32_0 = arith.constant 0 : i32
    %c0_i32_1 = arith.constant 0 : i32
    return %c0_i32, %c0_i32_0 : i32, i32
  }
  func.func @transform_4(%arg0: i32) -> (i32, i32, i32) {
    %c0_i32 = arith.constant 0 : i32
    %c0_i32_0 = arith.constant 0 : i32
    %c0_i32_1 = arith.constant 0 : i32
    return %arg0, %c0_i32, %c0_i32_0 : i32, i32, i32
  }
}

module attributes {stable_mosaic.version = 11 : i64} {
  func.func @_jre_out_kernel(%arg0: i32, %arg1: memref<1x4x256xf32, #tpu.memory_space<vmem>>, %arg2: memref<1x8x256xf32, #tpu.memory_space<vmem>>, %arg3: memref<8x4xf32, #tpu.memory_space<vmem>>, %arg4: memref<8x1xf32, #tpu.memory_space<vmem>>, %arg5: memref<1x8x256xf32, #tpu.memory_space<vmem>>) attributes {dimension_semantics = [#tpu.dimension_semantics<parallel>], iteration_bounds = array<i64: 2>, scalar_prefetch = 0 : i64, scratch_operands = 0 : i64, tpu.core_type = #tpu.core_type<tc>, window_params = [{transform_indices = @transform_0, window_bounds = array<i64: 1, 4, 256>}, {transform_indices = @transform_1, window_bounds = array<i64: 1, 8, 256>}, {pipeline_mode = #tpu.pipeline_mode<synchronous>, transform_indices = @transform_2, window_bounds = array<i64: 8, 4>}, {pipeline_mode = #tpu.pipeline_mode<synchronous>, transform_indices = @transform_3, window_bounds = array<i64: 8, 1>}, {transform_indices = @transform_4, window_bounds = array<i64: 1, 8, 256>}]} {
    %c0 = arith.constant 0 : index
    %c0_0 = arith.constant 0 : index
    %0 = vector.load %arg3[%c0, %c0_0] : memref<8x4xf32, #tpu.memory_space<vmem>>, vector<8x4xf32>
    %c0_1 = arith.constant 0 : index
    %c0_2 = arith.constant 0 : index
    %1 = vector.load %arg4[%c0_1, %c0_2] : memref<8x1xf32, #tpu.memory_space<vmem>>, vector<8x1xf32>
    %c0_3 = arith.constant 0 : index
    %c0_4 = arith.constant 0 : index
    %c0_5 = arith.constant 0 : index
    %2 = vector.load %arg1[%c0_3, %c0_4, %c0_5] : memref<1x4x256xf32, #tpu.memory_space<vmem>>, vector<1x4x256xf32>
    %3 = vector.shape_cast %2 : vector<1x4x256xf32> to vector<4x256xf32>
    %cst = arith.constant dense<0.000000e+00> : vector<8x256xf32>
    %4 = tpu.matmul %0, %3, %cst {dimension_numbers = #tpu.dot_dimension_numbers<[1], [0], [0], [1], [0, 0, 1, 1], [], []>} : vector<8x4xf32>, vector<4x256xf32>, vector<8x256xf32> -> vector<8x256xf32>
    %5 = vector.broadcast %1 : vector<8x1xf32> to vector<8x256xf32>
    %6 = arith.addf %4, %5 : vector<8x256xf32>
    %c0_6 = arith.constant 0 : index
    %c0_7 = arith.constant 0 : index
    %c0_8 = arith.constant 0 : index
    %7 = vector.load %arg2[%c0_6, %c0_7, %c0_8] : memref<1x8x256xf32, #tpu.memory_space<vmem>>, vector<1x8x256xf32>
    %8 = vector.shape_cast %7 : vector<1x8x256xf32> to vector<8x256xf32>
    %9 = arith.addf %6, %8 : vector<8x256xf32>
    %c0_9 = arith.constant 0 : index
    %c0_10 = arith.constant 0 : index
    %c0_11 = arith.constant 0 : index
    %10 = vector.load %arg5[%c0_9, %c0_10, %c0_11] : memref<1x8x256xf32, #tpu.memory_space<vmem>>, vector<1x8x256xf32>
    %11 = vector.shape_cast %10 : vector<1x8x256xf32> to vector<8x256xf32>
    %12 = vector.shape_cast %9 : vector<8x256xf32> to vector<1x8x256xf32>
    tpu.vector_store %arg5[%c0_9, %c0_10, %c0_11], %12 {strides = array<i32>} : memref<1x8x256xf32, #tpu.memory_space<vmem>>, vector<1x8x256xf32>,
    return
  }
  func.func @transform_0(%arg0: i32) -> (i32, i32, i32) {
    %c0_i32 = arith.constant 0 : i32
    %c0_i32_0 = arith.constant 0 : i32
    %c0_i32_1 = arith.constant 0 : i32
    return %arg0, %c0_i32, %c0_i32_0 : i32, i32, i32
  }
  func.func @transform_1(%arg0: i32) -> (i32, i32, i32) {
    %c0_i32 = arith.constant 0 : i32
    %c0_i32_0 = arith.constant 0 : i32
    %c0_i32_1 = arith.constant 0 : i32
    return %arg0, %c0_i32, %c0_i32_0 : i32, i32, i32
  }
  func.func @transform_2(%arg0: i32) -> (i32, i32) {
    %c0_i32 = arith.constant 0 : i32
    %c0_i32_0 = arith.constant 0 : i32
    %c0_i32_1 = arith.constant 0 : i32
    return %c0_i32, %c0_i32_0 : i32, i32
  }
  func.func @transform_3(%arg0: i32) -> (i32, i32) {
    %c0_i32 = arith.constant 0 : i32
    %c0_i32_0 = arith.constant 0 : i32
    %c0_i32_1 = arith.constant 0 : i32
    return %c0_i32, %c0_i32_0 : i32, i32
  }
  func.func @transform_4(%arg0: i32) -> (i32, i32, i32) {
    %c0_i32 = arith.constant 0 : i32
    %c0_i32_0 = arith.constant 0 : i32
    %c0_i32_1 = arith.constant 0 : i32
    return %arg0, %c0_i32, %c0_i32_0 : i32, i32, i32
  }
}

</mosaic_0001>

<bundles_post_ra>
// kernel: jre_forward.3
= control target key start
LH: loop header
LB: loop body
LE: loop exit
PB: predicated region body
PF: predicated region fallthrough
CT: control target
= control target key end

     0   :  { %s416_s15 = smov 0   ;;  %s442_s0 = inlined_call_operand.vmem [shape: f32[2,4,256], index: 0, kind: input, shape index: {}]   ;;  %s443_s1 = inlined_call_operand.vmem [shape: f32[2,8,256], index: 1, kind: input, shape index: {}]   ;;  %s444_s2 = inlined_call_operand.vmem [shape: f32[8,4], index: 2, kind: input, shape index: {}]   ;;  %s445_s3 = inlined_call_operand.vmem [shape: f32[8,1], index: 3, kind: input, shape index: {}]   ;;  %s446_s4 = inlined_call_operand.vmem [shape: f32[2,8,256], index: 4, kind: output, shape index: {}]  }
   0x1 LB: > { %s352_s16 = sadd.s32 4294967295, %s388_s15   ;;  %p356_p0 = scmp.ge.s32.totalorder %s388_s15, 1  ;;  %s388_s15 = sphi %s416_s15, %s14_s15  }
   0x2   : > { %p172_p1 = scmp.lt.s32.totalorder %s388_s15, 3 }
   0x4   : > { %p173_p2 = pnand %p356_p0, %p172_p1 }
   0x5   : > { %p203_p3 = scmp.lt.s32.totalorder (!%p173_p2), %s352_s16, 1 }
   0x6   : > { %176 = sbr.rel (%p173_p2) target bundleno = 156 (0x9c), region = 36 }
   0xb   : > { %v219_v0 = vld [vmem:[%s445_s3] sm:$0xff]  ;;  %v390_v1 = vmov 0   ;;  %s448_s16 = smov (!%p203_p3, %s352_s16), 1  ;;  %vm234_vm0 = vcmask 1043456   ;;  %vm230_vm1 = vcmask 31744  }
   0xc   : > { %381 = vset.pattern.permute.xlu0 %v390_v1  ;;  %s369_s19 = sshll.u32 %s448_s16, 3  ;;  %v218_v3 = vld [vmem:[%s444_s2] sm:$0xff]  ;;  %s370_s25 = sshll.u32 %s448_s16, 4 }
   0xd   : > { %223 = vperm.xlu0 %381, %v219_v0   ;;  %s207_s22 = scalar_lea.vmem %s442_s0, %s369_s19  ;;  %s212_s28 = scalar_lea.vmem %s443_s1, %s370_s25 }
   0xe   : > { %v220_v2 = vld [vmem:[%s207_s22] sm:$0xff]  ;;  %v280_v10 = vld [vmem:[%s212_s28 + $0x8] sm:$0xff]  ;;  %s217_s5 = scalar_lea.vmem %s446_s4, %s370_s25 }
   0xf   : > { %227 = vst [vmem:[#allocation1] ss:$2 sm:$0xff] %v220_v2  ;;  %v279_v8 = vld [vmem:[%s212_s28] sm:$0xff] }
  0x16   : > { %v228_v4 = vld.sshfl [vmem:[#allocation1] sm:$0xff pattern:$0x75316420]  ;;  %v229_v5 = vld.sshfl [vmem:[#allocation1 + $0x8] sm:$0xff pattern:$0x75316420] }
  0x17   : > { %363 = vmatpush.msk.msra.mxu0 %vm234_vm0, %v228_v4  ;;  %365 = vmatpush.msk.msra.mxu1 %vm234_vm0, %v229_v5 }
  0x18   : > { %364 = vmatmul.msk.f32.vlgmr.msra.gmra.mxu0 %vm230_vm1, %v218_v3  ;;  %366 = vmatmul.msk.f32.vlgmr.msra.gmra.mxu1 %vm230_vm1, %v218_v3 }
  0x7f   : > { %v224_v6 = vpop.permute.xlu0 %223 }
  0x95   : > { %v256_v7 = vpop.f32.mrf.mxu0  ;;  %v276_v9 = vpop.f32.mrf.mxu1 }
  0x96   : > { %v257_v11 = vadd.f32 %v256_v7, %v224_v6  ;;  %v277_v12 = vadd.f32 %v276_v9, %v224_v6 }
  0x98   : > { %v281_v13 = vadd.f32 %v279_v8, %v257_v11  ;;  %v282_v14 = vadd.f32 %v280_v10, %v277_v12 }
  0x9a   : > { %283 = vst [vmem:[%s217_s5] sm:$0xff] %v281_v13 }
  0x9b   : > { %284 = vst [vmem:[%s217_s5 + $0x8] sm:$0xff] %v282_v14 }
  0x9c PF: > { %s14_s15 = sadd.s32 1, %s388_s15  }
  0x9d   : > { %p11_p4 = scmp.ge.s32.totalorder %s14_s15, 4  }
  0x9f   :  { %13 = sbr.rel (!%p11_p4) target bundleno = 1 (0x1), region = 69 }

// kernel: jre_forward.2
= control target key start
LH: loop header
LB: loop body
LE: loop exit
PB: predicated region body
PF: predicated region fallthrough
CT: control target
= control target key end

     0   :  { %s619_s15 = smov 0   ;;  %s662_s0 = inlined_call_operand.vmem [shape: f32[2,4,512], index: 0, kind: input, shape index: {}]   ;;  %s663_s1 = inlined_call_operand.vmem [shape: f32[4,4], index: 1, kind: input, shape index: {}]   ;;  %s664_s2 = inlined_call_operand.vmem [shape: f32[4,4], index: 2, kind: input, shape index: {}]   ;;  %s665_s3 = inlined_call_operand.vmem [shape: f32[4,1], index: 3, kind: input, shape index: {}]   ;;  %s666_s4 = inlined_call_operand.vmem [shape: f32[2,4,256], index: 4, kind: output, shape index: {}]  }
   0x1 LB: > { %s546_s16 = sadd.s32 4294967295, %s591_s15   ;;  %p550_p0 = scmp.ge.s32.totalorder %s591_s15, 1  ;;  %s591_s15 = sphi %s619_s15, %s14_s15  }
   0x2   : > { %p162_p1 = scmp.lt.s32.totalorder %s591_s15, 3 }
   0x4   : > { %p163_p2 = pnand %p550_p0, %p162_p1 }
   0x5   : > { %p188_p3 = scmp.lt.s32.totalorder (!%p163_p2), %s546_s16, 1 }
   0x6   : > { %166 = sbr.rel (%p163_p2) target bundleno = 358 (0x166), region = 36 }
   0xb   : > { %s668_s16 = smov (!%p188_p3, %s546_s16), 1  ;;  %v200_v1 = vld [vmem:[%s665_s3] sm:$0xf]  ;;  %v593_v2 = vmov 0   ;;  %vm211_vm0 = vcmask 1043456   ;;  %vm207_vm1 = vcmask 31744  }
   0xc   : > { %s569_s17 = sshll.u32 %s668_s16, 4  ;;  %580 = vset.pattern.permute.xlu0 %v593_v2  ;;  %v199_v4 = vld [vmem:[%s664_s2] sm:$0xf]  ;;  %vm416_vm2 = vcmask 27648   ;;  %s570_s27 = sshll.u32 %s668_s16, 3 }
   0xd   : > { %s192_s20 = scalar_lea.vmem %s662_s0, %s569_s17  ;;  %309 = vperm.xlu0 %580, %v200_v1   ;;  %v198_v9 = vld [vmem:[%s663_s1] sm:$0xf]  ;;  %s197_s30 = scalar_lea.vmem %s666_s4, %s570_s27 }
   0xe   : > { %v202_v0 = vld [vmem:[%s192_s20 + $0x8] sm:$0xff]  ;;  %v201_v3 = vld [vmem:[%s192_s20] sm:$0xff] }
   0xf   : > { %204 = vst [vmem:[#allocation1] ss:$2 sm:$0xff] %v202_v0 }
  0x10   : > { %316 = vst [vmem:[#allocation1 + $0x10] ss:$2 sm:$0xff] %v202_v0 }
  0x16   : > { %v205_v5 = vld.sshfl [vmem:[#allocation1] sm:$0xff pattern:$0x75316420]  ;;  %v206_v6 = vld.sshfl [vmem:[#allocation1 + $0x8] sm:$0xff pattern:$0x75316420] }
  0x17   : > { %257 = vst [vmem:[#allocation1] ss:$2 sm:$0xff] %v201_v3  ;;  %555 = vmatpush.msk.msra.mxu0 %vm211_vm0, %v205_v5  ;;  %557 = vmatpush.msk.msra.mxu1 %vm211_vm0, %v206_v6  ;;  %v319_v7 = vld.sshfl [vmem:[#allocation1 + $0x10] sm:$0xff pattern:$0x75316420] }
  0x18   : > { %556 = vmatmul.msk.f32.vlgmr.msra.gmra.mxu0 %vm207_vm1, %v199_v4  ;;  %558 = vmatmul.msk.f32.vlgmr.msra.gmra.mxu1 %vm207_vm1, %v199_v4  ;;  %v320_v8 = vld.sshfl [vmem:[#allocation1 + $0x18] sm:$0xff pattern:$0x75316420] }
  0x19   : > { %327 = vst [vmem:[#allocation1 + $0x10] ss:$2 sm:$0xff] %v202_v0 }
  0x1e   : > { %v258_v10 = vld.sshfl [vmem:[#allocation1] sm:$0xff pattern:$0x75316420]  ;;  %v259_v11 = vld.sshfl [vmem:[#allocation1 + $0x8] sm:$0xff pattern:$0x75316420] }
  0x1f   : > { %559 = vmatpush.msk.msra.mxu2 %vm211_vm0, %v258_v10  ;;  %561 = vmatpush.msk.msra.mxu3 %vm211_vm0, %v259_v11  ;;  %314 = vst [vmem:[#allocation1] ss:$2 sm:$0xff] %v201_v3 }
  0x20   : > { %560 = vmatmul.msk.f32.vlgmr.msra.gmra.mxu2 %vm207_vm1, %v198_v9  ;;  %562 = vmatmul.msk.f32.vlgmr.msra.gmra.mxu3 %vm207_vm1, %v198_v9  ;;  %v330_v12 = vld.sshfl [vmem:[#allocation1 + $0x10] sm:$0xff pattern:$0x75316420]  ;;  %v331_v13 = vld.sshfl [vmem:[#allocation1 + $0x18] sm:$0xff pattern:$0x75316420] }
  0x21   : > { %391 = vmatpush.xpose.msrb.mxu2 %v330_v12  ;;  %411 = vmatpush.xpose.msrb.mxu3 %v331_v13 }
  0x26   : > { %v317_v14 = vld.sshfl [vmem:[#allocation1] sm:$0xff pattern:$0x75316420]  ;;  %v318_v15 = vld.sshfl [vmem:[#allocation1 + $0x8] sm:$0xff pattern:$0x75316420] }
  0x27   : > { %325 = vst [vmem:[#allocation1] ss:$2 sm:$0xff] %v201_v3 }
  0x28   : > { %392 = vmatmul.f32.vlgmr.msrb.gmra.mxu2 %v319_v7  ;;  %412 = vmatmul.f32.vlgmr.msrb.gmra.mxu3 %v320_v8 }
  0x2e   : > { %v328_v16 = vld.sshfl [vmem:[#allocation1] sm:$0xff pattern:$0x75316420]  ;;  %v329_v17 = vld.sshfl [vmem:[#allocation1 + $0x8] sm:$0xff pattern:$0x75316420] }
  0x2f   : > { %351 = vmatpush.xpose.msrb.mxu0 %v328_v16  ;;  %371 = vmatpush.xpose.msrb.mxu1 %v329_v17 }
  0x32   : > { %352 = vmatmul.f32.vlgmr.msrb.gmra.mxu0 %v317_v14  ;;  %372 = vmatmul.f32.vlgmr.msrb.gmra.mxu1 %v318_v15 }
  0x7f   : > { %v310_v20 = vpop.permute.xlu0 %309 }
  0x95   : > { %v233_v18 = vpop.f32.mrf.mxu0  ;;  %v253_v19 = vpop.f32.mrf.mxu1 }
  0xa3   : > { %v284_v21 = vpop.f32.mrf.mxu2  ;;  %v304_v22 = vpop.f32.mrf.mxu3 }
  0xa4   : > { %v285_v23 = vadd.f32 %v284_v21, %v233_v18  ;;  %v305_v24 = vadd.f32 %v304_v22, %v253_v19 }
  0xa6   : > { %v312_v25 = vadd.f32 %v310_v20, %v285_v23  ;;  %v313_v26 = vadd.f32 %v310_v20, %v305_v24 }
  0xa8   : > { %563 = vmatpush.msk.msra.mxu0 %vm211_vm0, %v312_v25  ;;  %565 = vmatpush.msk.msra.mxu1 %vm211_vm0, %v313_v26 }
  0xab   : > { %v393_v27 = vpop.f32.mrf.mxu2  ;;  %v413_v31 = vpop.f32.mrf.mxu3 }
  0xaf   : > { %v353_v28 = vpop.f32.mrf.mxu0  ;;  %v373_v29 = vpop.f32.mrf.mxu1 }
  0xb0   : > { %v374_v30 = vadd.f32 %v373_v29, %v353_v28 }
  0xb2   : > { %v394_v32 = vadd.f32 %v393_v27, %v374_v30 }
  0xb4   : > { %v414_v33 = vadd.f32 %v413_v31, %v394_v32 }
  0xb6   : > { %v417_v34 = vsel %vm416_vm2, %v414_v33, -inf }
  0xb7   : > { %v418_v35 = vrot.slane %v417_v34, 4 }
  0xb9   : > { %v419_v36 = vmax.f32 %v417_v34, %v418_v35 }
  0xbb   : > { %v420_v37 = vrot.slane %v419_v36, 2 }
  0xbd   : > { %v421_v38 = vmax.f32 %v419_v36, %v420_v37 }
  0xbf   : > { %v422_v39 = vrot.slane %v421_v38, 1 }
  0xc1   : > { %v423_v40 = vmax.f32 %v421_v38, %v422_v39 }
  0xc3   : > { %v424_v41 = vsub.f32 %v414_v33, %v423_v40 }
  0xc5   : > { %v425_v42 = vmul.f32 1.442695, %v424_v41 }
  0xc7   : > { %581 = vpow2.f32 %v425_v42 }
  0xcd   : > { %v582_v43 = vpop.eup %581 }
  0xce   : > { %v427_v44 = vsel %vm416_vm2, %v582_v43, 0.0 }
  0xcf   : > { %v428_v45 = vrot.slane %v427_v44, 4 }
  0xd1   : > { %v429_v46 = vadd.f32 %v428_v45, %v427_v44 }
  0xd3   : > { %v430_v47 = vrot.slane %v429_v46, 2 }
  0xd5   : > { %v431_v48 = vadd.f32 %v430_v47, %v429_v46 }
  0xd7   : > { %v432_v49 = vrot.slane %v431_v48, 1 }
  0xd9   : > { %v433_v50 = vadd.f32 %v432_v49, %v431_v48 }
  0xdb   : > { %583 = vrcp.f32 %v433_v50 }
  0xe1   : > { %v584_v51 = vpop.eup %583 }
  0xe2   : > { %v435_v52 = vmul.f32 %v584_v51, %v582_v43 }
  0xe4   : > { %564 = vmatmul.msk.f32.vlgmr.msra.gmra.mxu0 %vm207_vm1, %v435_v52  ;;  %566 = vmatmul.msk.f32.vlgmr.msra.gmra.mxu1 %vm207_vm1, %v435_v52 }
 0x161   : > { %v482_v53 = vpop.f32.mrf.mxu1  ;;  %v462_v55 = vpop.f32.mrf.mxu0 }
 0x162   : > { %v487_v54 = vrot.slane %v482_v53, 4 }
 0x164   : > { %v488_v56 = vsel %vm211_vm0, %v462_v55, %v487_v54 }
 0x165   : > { %490 = vst [vmem:[%s197_s30] sm:$0xff] %v488_v56 }
 0x166 PF: > { %s14_s15 = sadd.s32 1, %s591_s15  }
 0x167   : > { %p11_p4 = scmp.ge.s32.totalorder %s14_s15, 4  }
 0x169   :  { %13 = sbr.rel (!%p11_p4) target bundleno = 1 (0x1), region = 68 }

</bundles_post_ra>
